<compile_context>
chip_gen: v7x
topology: tpu7x:2x2x1
jax: 0.10.0
libtpu: 0.0.40
codegen_flags: <defaults>
</compile_context>

<pallas_src>
import functools

import jax
import jax.numpy as jnp
from jax import lax
from jax.experimental import pallas as pl
from jax.experimental.pallas import tpu as pltpu


def _round_up(v, m):
    return -(-v // m) * m


# --------------------------------------------------------------------- kernel
def _normalize_kernel(x_ref, o_ref, *, power, axis, eps):
    """Lp-normalize the tile along `axis` (module semantics: x / sum(x**p)**(1/p))."""
    x = x_ref[...].astype(jnp.float32)
    if power == 2:
        s = jnp.sum(x * x, axis=axis, keepdims=True)     # XLU reduce
    else:
        # NOTE: matches the PyTorch module exactly (x.pow(p), not |x|**p).
        s = jnp.sum(x ** power, axis=axis, keepdims=True)
    if eps:  # static; off by default to preserve exact module semantics
        s = jnp.maximum(s, eps)
    if power == 2:
        inv = lax.rsqrt(s)                               # EUP (free slot)
    else:
        inv = s ** (-1.0 / power)
    o_ref[...] = (x * inv).astype(o_ref.dtype)           # VPU multiply


# ------------------------------------------------------------------- sizing
_PER_TILE_BUDGET = 4 << 20   # ~4 MiB/tile -> <=16 MiB for 4 live double-buffered tiles
_VMEM_LIMIT = 32 << 20       # safe on v5e/v6e (128 MiB phys) and v7x (64 MiB phys)
_MIN_GRID_STEPS = 4          # keep the pipeline and both v7x TensorCores busy


# -------------------------------------------------------------------- wrapper
@functools.partial(jax.jit, static_argnames=("power", "eps"))
def pallas_normalize(x, power=2, eps=0.0):
    """out = x / (x**power).sum(axis=1, keepdims=True) ** (1/power)  (PyTorch dim=1)."""
    nd = x.ndim
    assert nd >= 2, "Normalize expects at least 2 dims"
    itemsize = jnp.dtype(x.dtype).itemsize

    if nd == 2:
        # dim=1 is already the last (lane) axis: lane reduce, no transpose/pad.
        M, D = x.shape
        tm = _PER_TILE_BUDGET // max(D * itemsize, 1)
        tm = max(8, (tm // 8) * 8)
        if M >= 4 * 8:
            # enough rows: ensure >= _MIN_GRID_STEPS grid steps for pipelining.
            tm = min(tm, max(8, _round_up(-(-M // _MIN_GRID_STEPS), 8)))
        tm = min(tm, _round_up(M, 8))        # don't over-allocate for small M
        grid = (pl.cdiv(M, tm),)             # ragged last block: writes are masked
        kern = functools.partial(_normalize_kernel, power=power, axis=-1, eps=eps)
        return pl.pallas_call(
            kern,
            out_shape=jax.ShapeDtypeStruct((M, D), x.dtype),
            grid=grid,
            in_specs=[pl.BlockSpec((tm, D), lambda i: (i, 0))],
            out_specs=pl.BlockSpec((tm, D), lambda i: (i, 0)),
            compiler_params=pltpu.CompilerParams(
                dimension_semantics=("parallel",),
                vmem_limit_bytes=_VMEM_LIMIT),
        )(x)

    # nd >= 3: keep the natural contiguous layout.  (N, C, d2, ...) -> (N, C, HW)
    # is a free metadata reshape; the normalization dim C sits on sublanes and
    # the reduction is a sublane (axis=-2) reduce.  No transpose, no lane pad.
    N, C = x.shape[0], x.shape[1]
    HW = 1
    for s in x.shape[2:]:
        HW *= s
    x3 = x.reshape(N, C, HW)

    if HW <= 128:
        t_hw = HW                            # full-extent last dim is always legal
    else:
        t_hw = _PER_TILE_BUDGET // max(C * itemsize, 1)
        t_hw = max(128, (t_hw // 128) * 128)
        t_hw = min(t_hw, _round_up(HW, 128))
        if N * pl.cdiv(HW, t_hw) < _MIN_GRID_STEPS:
            want = -(-_MIN_GRID_STEPS // N)
            t_alt = max(128, _round_up(-(-HW // want), 128))
            t_hw = min(t_hw, t_alt)

    grid = (N, pl.cdiv(HW, t_hw))            # ragged last HW block: writes are masked
    kern = functools.partial(_normalize_kernel, power=power, axis=-2, eps=eps)
    out3 = pl.pallas_call(
        kern,
        out_shape=jax.ShapeDtypeStruct((N, C, HW), x.dtype),
        grid=grid,
        in_specs=[pl.BlockSpec((1, C, t_hw), lambda n, j: (n, 0, j))],
        out_specs=pl.BlockSpec((1, C, t_hw), lambda n, j: (n, 0, j)),
        compiler_params=pltpu.CompilerParams(
            dimension_semantics=("parallel", "parallel"),
            vmem_limit_bytes=_VMEM_LIMIT),
    )(x3)
    return out3.reshape(x.shape)


# ----------------------------------------------------------------------- main
if __name__ == "__main__":
    key = jax.random.PRNGKey(0)
    # NCHW-style input: batch=2, channels=4 (normalization dim), spatial=16x16.
    x = jax.random.normal(key, (2, 4, 16, 16), jnp.float32)

    out = pallas_normalize(x, power=2)
    out = jax.block_until_ready(out)

    # Pure-JAX reference (exact PyTorch forward semantics).
    norm = jnp.power(jnp.sum(jnp.power(x, 2.0), axis=1, keepdims=True), 0.5)
    ref = x / norm

    assert out.shape == x.shape, out.shape
    assert out.dtype == x.dtype
    assert bool(jnp.all(jnp.isfinite(out)))
    assert bool(jnp.allclose(out, ref, atol=1e-5, rtol=1e-5))
    print("KERNEL_OK")
</pallas_src>

<mosaic_0001>
module attributes {stable_mosaic.version = 11 : i64} {
  func.func @_normalize_kernel(%arg0: i32, %arg1: i32, %arg2: memref<1x4x128xf32, #tpu.memory_space<vmem>>, %arg3: memref<1x4x128xf32, #tpu.memory_space<vmem>>) attributes {dimension_semantics = [#tpu.dimension_semantics<parallel>, #tpu.dimension_semantics<parallel>], iteration_bounds = array<i64: 2, 2>, scalar_prefetch = 0 : i64, scratch_operands = 0 : i64, tpu.core_type = #tpu.core_type<tc>, window_params = [{transform_indices = @transform_0, window_bounds = array<i64: 1, 4, 128>}, {transform_indices = @transform_1, window_bounds = array<i64: 1, 4, 128>}]} {
    %c0 = arith.constant 0 : index
    %c0_0 = arith.constant 0 : index
    %c0_1 = arith.constant 0 : index
    %0 = vector.load %arg2[%c0, %c0_0, %c0_1] : memref<1x4x128xf32, #tpu.memory_space<vmem>>, vector<1x4x128xf32>
    %1 = arith.mulf %0, %0 : vector<1x4x128xf32>
    %cst = arith.constant dense<0.000000e+00> : vector<1x128xf32>
    %2 = vector.multi_reduction <add>, %1, %cst [1] : vector<1x4x128xf32> to vector<1x128xf32>
    %3 = vector.shape_cast %2 : vector<1x128xf32> to vector<1x1x128xf32>
    %4 = math.rsqrt %3 : vector<1x1x128xf32>
    %5 = vector.broadcast %4 : vector<1x1x128xf32> to vector<1x4x128xf32>
    %6 = arith.mulf %0, %5 : vector<1x4x128xf32>
    %c0_2 = arith.constant 0 : index
    %c0_3 = arith.constant 0 : index
    %c0_4 = arith.constant 0 : index
    %7 = vector.load %arg3[%c0_2, %c0_3, %c0_4] : memref<1x4x128xf32, #tpu.memory_space<vmem>>, vector<1x4x128xf32>
    tpu.vector_store %arg3[%c0_2, %c0_3, %c0_4], %6 {strides = array<i32>} : memref<1x4x128xf32, #tpu.memory_space<vmem>>, vector<1x4x128xf32>,
    return
  }
  func.func @transform_0(%arg0: i32, %arg1: i32) -> (i32, i32, i32) {
    %c0_i32 = arith.constant 0 : i32
    %c0_i32_0 = arith.constant 0 : i32
    return %arg0, %c0_i32, %arg1 : i32, i32, i32
  }
  func.func @transform_1(%arg0: i32, %arg1: i32) -> (i32, i32, i32) {
    %c0_i32 = arith.constant 0 : i32
    %c0_i32_0 = arith.constant 0 : i32
    return %arg0, %c0_i32, %arg1 : i32, i32, i32
  }
}

</mosaic_0001>

<bundles_post_ra>
// kernel: pallas_normalize.1
= control target key start
LH: loop header
LB: loop body
LE: loop exit
PB: predicated region body
PF: predicated region fallthrough
CT: control target
= control target key end

     0   :  { %s350_s6 = smov 0   ;;  %s352_s7 = smov 0   ;;  %s401_s0 = inlined_call_operand.vmem [shape: f32[2,4,256], index: 0, kind: input, shape index: {}]   ;;  %s402_s1 = inlined_call_operand.vmem [shape: f32[2,4,256], index: 1, kind: output, shape index: {}]  }
   0x1   :  { %s354_s8 = smov 0   ;;  %s356_s9 = smov 0  }
   0x2   :  { %s358_s10 = smov 0  }
   0x3 LB: > { %s20_s11 = sadd.s32 1, %s330_s8  ;;  %s23_s12 = sadd.s32 1, %s334_s9  ;;  %s338_s10 = sphi %s358_s10, %s11_s10   ;;  %s334_s9 = sphi %s356_s9, %s406_s9   ;;  %s330_s8 = sphi %s354_s8, %s405_s8   ;;  %s326_s7 = sphi %s352_s7, %s404_s7   ;;  %s322_s6 = sphi %s350_s6, %s403_s6  }
   0x4   : > { %p21_p0 = scmp.ge.s32.totalorder %s20_s11, 2  ;;  %p251_p1 = scmp.ge.s32.totalorder %s338_s10, 1 }
   0x5   : > { %p106_p2 = scmp.lt.s32.totalorder %s338_s10, 5 }
   0x6   : > { %s408_s11 = smov (%p21_p0, %s20_s11), 0  ;;  %s410_s12 = smov (!%p21_p0, %s23_s12), %s334_s9 }
   0x7   : > { %p107_p3 = pnand %p251_p1, %p106_p2  ;;  %p25_p4 = scmp.ge.s32.totalorder %s410_s12, 2 }
   0x8   : > { %p132_p5 = scmp.lt.s32.totalorder (!%p107_p3), %s326_s7, 1  ;;  %p134_p6 = scmp.lt.s32.totalorder (!%p107_p3), %s322_s6, 1  ;;  %vm150_vm0 = vcmask (!%p107_p3), 1043456  }
   0x9   : > { %s412_s12 = smov (%p25_p4, %s410_s12), 0  ;;  %110 = sbr.rel (%p107_p3) target bundleno = 51 (0x33), region = 24 }
  0x10   : > { %s414_s7 = smov (!%p132_p5, %s326_s7), 1  ;;  %s416_s6 = smov (!%p134_p6, %s322_s6), 1 }
  0x11   : > { %s252_s13 = sshll.u32 %s414_s7, 1 }
  0x12   : > { %s137_s14 = sadd.s32 %s252_s13, %s416_s6 }
  0x13   : > { %s253_s15 = sshll.u32 %s137_s14, 2 }
  0x14   : > { %s139_s18 = scalar_lea.vmem %s401_s0, %s253_s15  ;;  %s147_s21 = scalar_lea.vmem %s402_s1, %s253_s15 }
  0x15   : > { %v148_v0 = vld [vmem:[%s139_s18] sm:$0xf] }
  0x16   : > { %v149_v1 = vmul.f32 %v148_v0, %v148_v0 }
  0x18   : > { %v151_v2 = vsel %vm150_vm0, %v149_v1, 0.0 }
  0x19   : > { %v152_v3 = vrot.slane %v151_v2, 4 }
  0x1b   : > { %v153_v4 = vadd.f32 %v152_v3, %v151_v2 }
  0x1d   : > { %v154_v5 = vrot.slane %v153_v4, 2 }
  0x1f   : > { %v155_v6 = vadd.f32 %v154_v5, %v153_v4 }
  0x21   : > { %v156_v7 = vrot.slane %v155_v6, 1 }
  0x23   : > { %v157_v8 = vadd.f32 %v156_v7, %v155_v6 }
  0x25   : > { %298 = vrsqrt.f32 %v157_v8 }
  0x2f   : > { %v299_v9 = vpop.eup %298 }
  0x30   : > { %v159_v10 = vmul.f32 %v299_v9, %v148_v0 }
  0x32   : > { %160 = vst [vmem:[%s147_s21] sm:$0xf] %v159_v10 }
  0x33 PF: > { %s11_s10 = sadd.s32 1, %s338_s10   ;;  %s403_s6 = smov %s330_s8 }
  0x34   : > { %p8_p7 = scmp.ge.s32.totalorder %s11_s10, 6   ;;  %s404_s7 = smov %s334_s9 }
  0x35   : > { %s405_s8 = smov %s408_s11  ;;  %s406_s9 = smov %s412_s12 }
  0x36   :  { %10 = sbr.rel (!%p8_p7) target bundleno = 3 (0x3), region = 54 }

</bundles_post_ra>
